<compile_context>
chip_gen: v6e
topology: v6e:2x2x1
jax: 0.10.0
libtpu: 0.0.40
codegen_flags: <defaults>
</compile_context>

<pallas_src>
import functools

import jax
import jax.numpy as jnp
from jax.experimental import pallas as pl
from jax.experimental.pallas import tpu as pltpu

BN_EPS = 1e-5  # nn.BatchNorm1d default eps (the module's own eps=1e-6 is unused in forward)

_VMEM_LIMIT_BYTES = 64 * 1024 * 1024     # scoped VMEM requested from Mosaic
_SINGLE_PASS_BUDGET = 32 * 1024 * 1024   # conservative per-D-tile budget (safe on v5e..v7x)
_TWO_PASS_BUDGET = 16 * 1024 * 1024      # per-(N,D)-tile budget for the tiled passes


def _pack_factor(n, d):
    """Lane-packing factor k: fold k consecutive rows into lanes so rows are 128-wide."""
    if d >= 128 or 128 % d != 0:
        return 1
    k = 128 // d
    return k if (n % k == 0) else 1


def _tile_d_candidates(dp):
    cands = {c for c in (512, 256, 128) if c <= dp and dp % c == 0}
    cands.add(dp)  # full-extent block is always legal
    return sorted(cands, reverse=True)


def _single_pass_bytes(rows, tile_d, in_bytes, out_bytes):
    # x, y, out double-buffered by the pipeline + ~3 f32 temporaries in the body.
    return rows * tile_d * (2 * (2 * in_bytes) + 2 * out_bytes + 3 * 4)


def _two_pass_bytes(tile_n, tile_d, in_bytes, out_bytes):
    return tile_n * tile_d * (2 * (2 * in_bytes) + 2 * out_bytes + 2 * 4)


def _fused_kernel(x_ref, y_ref, scale_ref, shift_ref, o_ref, *, k, count, eps):
    """Single-pass: one D tile holds the full N extent -> exact per-channel stats."""
    z = x_ref[...].astype(jnp.float32) + y_ref[...].astype(jnp.float32)

    def fold(v):
        # Sum the k lane replicas of each channel. Lane layout: channel c lives at
        # lanes c, D+c, ..., (k-1)*D+c with k*D == lane width, so summing all cyclic
        # lane rotations by multiples of D gives the per-channel total, already
        # broadcast back over the same lane layout. XLU rolls, nearly free.
        if k == 1:
            return v
        d_sub = v.shape[-1] // k
        acc = v
        for i in range(1, k):
            acc = acc + pltpu.roll(v, shift=i * d_sub, axis=1)
        return acc

    inv_count = 1.0 / float(count)
    mean = fold(jnp.sum(z, axis=0, keepdims=True)) * inv_count          # (1, TILE_D)
    centered = z - mean
    var = fold(jnp.sum(centered * centered, axis=0, keepdims=True)) * inv_count
    a = scale_ref[...] * jax.lax.rsqrt(var + eps)
    o_ref[...] = (centered * a + shift_ref[...]).astype(o_ref.dtype)


def _stats_kernel(x_ref, y_ref, sum_ref, sq_ref):
    """Two-pass, pass 1: accumulate per-lane sum / sum-of-squares over the N axis."""
    z = x_ref[...].astype(jnp.float32) + y_ref[...].astype(jnp.float32)

    @pl.when(pl.program_id(1) == 0)
    def _():
        sum_ref[...] = jnp.zeros_like(sum_ref)
        sq_ref[...] = jnp.zeros_like(sq_ref)

    sum_ref[...] += jnp.sum(z, axis=0, keepdims=True)
    sq_ref[...] += jnp.sum(z * z, axis=0, keepdims=True)


def _apply_kernel(x_ref, y_ref, a_ref, b_ref, o_ref):
    """Two-pass, pass 2: out = a * (x + y) + b with precomputed per-channel a, b."""
    z = x_ref[...].astype(jnp.float32) + y_ref[...].astype(jnp.float32)
    o_ref[...] = (z * a_ref[...] + b_ref[...]).astype(o_ref.dtype)


def add_batchnorm(x, y, gamma, beta, alpha, bias, *, eps=BN_EPS,
                  force_two_pass=False, tile_n=None, tile_d=None):
    """AddBatchNorm forward. x, y: (B, L, D) -> (B, L, D)."""
    # TODO(synk): BatchNorm1d running_mean/running_var buffer updates are not emitted
    # (forward output does not depend on them).
    B, L, D = x.shape
    N = B * L
    out_dtype = x.dtype
    in_bytes = x.dtype.itemsize
    out_bytes = jnp.dtype(out_dtype).itemsize

    # Fold the two affine transforms (BN gamma/beta, then alpha/bias) into one.
    scale = alpha.astype(jnp.float32) * gamma.astype(jnp.float32)
    shift = alpha.astype(jnp.float32) * beta.astype(jnp.float32) + bias.astype(jnp.float32)

    # Lane-dense repacking for small D: (N, D) -> (N/k, k*D); channel c sits at lane i*D+c.
    k = _pack_factor(N, D)
    rows, dp = N // k, k * D
    x2 = x.reshape(rows, dp)
    y2 = y.reshape(rows, dp)
    scale_p = jnp.tile(scale, k).reshape(1, dp)
    shift_p = jnp.tile(shift, k).reshape(1, dp)

    d_cands = [tile_d] if tile_d is not None else _tile_d_candidates(dp)

    # --- Path 1: single HBM pass, full-N column per D tile -----------------------------
    if not force_two_pass:
        for td in d_cands:
            if _single_pass_bytes(rows, td, in_bytes, out_bytes) <= _SINGLE_PASS_BUDGET:
                kern = functools.partial(_fused_kernel, k=k, count=N, eps=eps)
                out2 = pl.pallas_call(
                    kern,
                    out_shape=jax.ShapeDtypeStruct((rows, dp), out_dtype),
                    grid=(dp // td,),
                    in_specs=[
                        pl.BlockSpec((rows, td), lambda d: (0, d)),
                        pl.BlockSpec((rows, td), lambda d: (0, d)),
                        pl.BlockSpec((1, td), lambda d: (0, d)),
                        pl.BlockSpec((1, td), lambda d: (0, d)),
                    ],
                    out_specs=pl.BlockSpec((rows, td), lambda d: (0, d)),
                    compiler_params=pltpu.CompilerParams(
                        dimension_semantics=("parallel",),
                        vmem_limit_bytes=_VMEM_LIMIT_BYTES,
                    ),
                )(x2, y2, scale_p, shift_p)
                return out2.reshape(B, L, D)

    # --- Path 2: two passes (N too large for resident full-N columns) ------------------
    td = d_cands[0]
    if tile_n is None:
        tn = 16
        for cand in (1024, 512, 256, 128, 64, 32, 16):
            if _two_pass_bytes(cand, td, in_bytes, out_bytes) <= _TWO_PASS_BUDGET:
                tn = cand
                break
    else:
        tn = tile_n

    rows_pad = ((rows + tn - 1) // tn) * tn
    if rows_pad != rows:
        pad = ((0, rows_pad - rows), (0, 0))
        x2p = jnp.pad(x2, pad)   # zero rows contribute 0 to sum and sum-of-squares
        y2p = jnp.pad(y2, pad)
    else:
        x2p, y2p = x2, y2
    nd, nn = dp // td, rows_pad // tn

    sums, sqs = pl.pallas_call(
        _stats_kernel,
        out_shape=(jax.ShapeDtypeStruct((1, dp), jnp.float32),
                   jax.ShapeDtypeStruct((1, dp), jnp.float32)),
        grid=(nd, nn),
        in_specs=[
            pl.BlockSpec((tn, td), lambda d, n: (n, d)),
            pl.BlockSpec((tn, td), lambda d, n: (n, d)),
        ],
        out_specs=(pl.BlockSpec((1, td), lambda d, n: (0, d)),
                   pl.BlockSpec((1, td), lambda d, n: (0, d))),
        compiler_params=pltpu.CompilerParams(
            dimension_semantics=("parallel", "arbitrary"),
            vmem_limit_bytes=_VMEM_LIMIT_BYTES,
        ),
    )(x2p, y2p)

    # Tiny per-channel stats math (D elements) in plain JAX.
    if k > 1:
        sums = sums.reshape(k, D).sum(axis=0)
        sqs = sqs.reshape(k, D).sum(axis=0)
    else:
        sums = sums.reshape(D)
        sqs = sqs.reshape(D)
    mean = sums / N
    var = jnp.maximum(sqs / N - mean * mean, 0.0)          # biased variance
    a = scale * jax.lax.rsqrt(var + eps)
    b = shift - a * mean
    a_p = jnp.tile(a, k).reshape(1, dp)
    b_p = jnp.tile(b, k).reshape(1, dp)

    out2 = pl.pallas_call(
        _apply_kernel,
        out_shape=jax.ShapeDtypeStruct((rows_pad, dp), out_dtype),
        grid=(nd, nn),
        in_specs=[
            pl.BlockSpec((tn, td), lambda d, n: (n, d)),
            pl.BlockSpec((tn, td), lambda d, n: (n, d)),
            pl.BlockSpec((1, td), lambda d, n: (0, d)),
            pl.BlockSpec((1, td), lambda d, n: (0, d)),
        ],
        out_specs=pl.BlockSpec((tn, td), lambda d, n: (n, d)),
        compiler_params=pltpu.CompilerParams(
            dimension_semantics=("parallel", "parallel"),
            vmem_limit_bytes=_VMEM_LIMIT_BYTES,
        ),
    )(x2p, y2p, a_p, b_p)
    return out2[:rows].reshape(B, L, D)


def _reference(x, y, gamma, beta, alpha, bias, eps=BN_EPS):
    """Plain-JAX reference for training-mode Add + BatchNorm1d + affine."""
    z = x.astype(jnp.float32) + y.astype(jnp.float32)
    mean = jnp.mean(z, axis=(0, 1), keepdims=True)
    var = jnp.mean((z - mean) ** 2, axis=(0, 1), keepdims=True)
    zh = (z - mean) * jax.lax.rsqrt(var + eps)
    zh = zh * gamma + beta
    return (alpha * zh + bias).astype(x.dtype)


if __name__ == "__main__":
    key = jax.random.PRNGKey(0)
    kx, ky, kg, kbt, ka, kb = jax.random.split(key, 6)

    def make_inputs(B, L, D):
        x = jax.random.normal(kx, (B, L, D), dtype=jnp.float32)
        y = jax.random.normal(ky, (B, L, D), dtype=jnp.float32)
        gamma = 1.0 + 0.1 * jax.random.normal(kg, (D,), dtype=jnp.float32)
        beta = 0.1 * jax.random.normal(kbt, (D,), dtype=jnp.float32)
        alpha = 1.0 + 0.1 * jax.random.normal(ka, (D,), dtype=jnp.float32)
        bias = 0.1 * jax.random.normal(kb, (D,), dtype=jnp.float32)
        return x, y, gamma, beta, alpha, bias

    # 1) Primary small shape: lane-packed single-pass path (D=32 -> packed to 128 lanes).
    args = make_inputs(2, 8, 32)
    out = add_batchnorm(*args)
    jax.block_until_ready(out)
    assert jnp.allclose(out, _reference(*args), atol=1e-4, rtol=1e-4), "mismatch (packed single-pass)"

    # 2) Single-pass with multiple D tiles (D=256 split into 128-wide lane tiles).
    args = make_inputs(2, 8, 256)
    out = add_batchnorm(*args, tile_d=128)
    jax.block_until_ready(out)
    assert jnp.allclose(out, _reference(*args), atol=1e-4, rtol=1e-4), "mismatch (tiled single-pass)"

    # 3) Large-N fallback (two-pass sum/sumsq accumulation) exercised at a small shape,
    #    including N-padding and multi-step accumulation over the "arbitrary" axis.
    args = make_inputs(4, 70, 256)
    out = add_batchnorm(*args, force_two_pass=True, tile_n=64, tile_d=128)
    jax.block_until_ready(out)
    assert jnp.allclose(out, _reference(*args), atol=1e-4, rtol=1e-4), "mismatch (two-pass)"

    print("KERNEL_OK")
</pallas_src>

<mosaic_0001>
module attributes {stable_mosaic.version = 11 : i64} {
  func.func @_fused_kernel(%arg0: i32, %arg1: memref<4x128xf32, #tpu.memory_space<vmem>>, %arg2: memref<4x128xf32, #tpu.memory_space<vmem>>, %arg3: memref<1x128xf32, #tpu.memory_space<vmem>>, %arg4: memref<1x128xf32, #tpu.memory_space<vmem>>, %arg5: memref<4x128xf32, #tpu.memory_space<vmem>>) attributes {dimension_semantics = [#tpu.dimension_semantics<parallel>], iteration_bounds = array<i64: 1>, scalar_prefetch = 0 : i64, scratch_operands = 0 : i64, tpu.core_type = #tpu.core_type<tc>, window_params = [{transform_indices = @transform_0, window_bounds = array<i64: 4, 128>}, {transform_indices = @transform_1, window_bounds = array<i64: 4, 128>}, {transform_indices = @transform_2, window_bounds = array<i64: 1, 128>}, {transform_indices = @transform_3, window_bounds = array<i64: 1, 128>}, {transform_indices = @transform_4, window_bounds = array<i64: 4, 128>}]} {
    %c0 = arith.constant 0 : index
    %c0_0 = arith.constant 0 : index
    %0 = vector.load %arg1[%c0, %c0_0] : memref<4x128xf32, #tpu.memory_space<vmem>>, vector<4x128xf32>
    %c0_1 = arith.constant 0 : index
    %c0_2 = arith.constant 0 : index
    %1 = vector.load %arg2[%c0_1, %c0_2] : memref<4x128xf32, #tpu.memory_space<vmem>>, vector<4x128xf32>
    %2 = arith.addf %0, %1 : vector<4x128xf32>
    %cst = arith.constant dense<0.000000e+00> : vector<128xf32>
    %3 = vector.multi_reduction <add>, %2, %cst [0] : vector<4x128xf32> to vector<128xf32>
    %4 = vector.shape_cast %3 : vector<128xf32> to vector<1x128xf32>
    %c32_i32 = arith.constant 32 : i32
    %5 = tpu.dynamic_rotate %4 by %c32_i32 dim 1 : vector<1x128xf32>, i32 -> vector<1x128xf32>
    %6 = arith.addf %4, %5 : vector<1x128xf32>
    %c64_i32 = arith.constant 64 : i32
    %7 = tpu.dynamic_rotate %4 by %c64_i32 dim 1 : vector<1x128xf32>, i32 -> vector<1x128xf32>
    %8 = arith.addf %6, %7 : vector<1x128xf32>
    %c96_i32 = arith.constant 96 : i32
    %9 = tpu.dynamic_rotate %4 by %c96_i32 dim 1 : vector<1x128xf32>, i32 -> vector<1x128xf32>
    %10 = arith.addf %8, %9 : vector<1x128xf32>
    %cst_3 = arith.constant 6.250000e-02 : f32
    %11 = vector.broadcast %cst_3 : f32 to vector<1x128xf32>
    %12 = arith.mulf %10, %11 : vector<1x128xf32>
    %13 = vector.broadcast %12 : vector<1x128xf32> to vector<4x128xf32>
    %14 = arith.subf %2, %13 : vector<4x128xf32>
    %15 = arith.mulf %14, %14 : vector<4x128xf32>
    %cst_4 = arith.constant dense<0.000000e+00> : vector<128xf32>
    %16 = vector.multi_reduction <add>, %15, %cst_4 [0] : vector<4x128xf32> to vector<128xf32>
    %17 = vector.shape_cast %16 : vector<128xf32> to vector<1x128xf32>
    %c32_i32_5 = arith.constant 32 : i32
    %18 = tpu.dynamic_rotate %17 by %c32_i32_5 dim 1 : vector<1x128xf32>, i32 -> vector<1x128xf32>
    %19 = arith.addf %17, %18 : vector<1x128xf32>
    %c64_i32_6 = arith.constant 64 : i32
    %20 = tpu.dynamic_rotate %17 by %c64_i32_6 dim 1 : vector<1x128xf32>, i32 -> vector<1x128xf32>
    %21 = arith.addf %19, %20 : vector<1x128xf32>
    %c96_i32_7 = arith.constant 96 : i32
    %22 = tpu.dynamic_rotate %17 by %c96_i32_7 dim 1 : vector<1x128xf32>, i32 -> vector<1x128xf32>
    %23 = arith.addf %21, %22 : vector<1x128xf32>
    %cst_8 = arith.constant 6.250000e-02 : f32
    %24 = vector.broadcast %cst_8 : f32 to vector<1x128xf32>
    %25 = arith.mulf %23, %24 : vector<1x128xf32>
    %c0_9 = arith.constant 0 : index
    %c0_10 = arith.constant 0 : index
    %26 = vector.load %arg3[%c0_9, %c0_10] : memref<1x128xf32, #tpu.memory_space<vmem>>, vector<1x128xf32>
    %cst_11 = arith.constant 9.99999974E-6 : f32
    %27 = vector.broadcast %cst_11 : f32 to vector<1x128xf32>
    %28 = arith.addf %25, %27 : vector<1x128xf32>
    %29 = math.rsqrt %28 : vector<1x128xf32>
    %30 = arith.mulf %26, %29 : vector<1x128xf32>
    %31 = vector.broadcast %30 : vector<1x128xf32> to vector<4x128xf32>
    %32 = arith.mulf %14, %31 : vector<4x128xf32>
    %c0_12 = arith.constant 0 : index
    %c0_13 = arith.constant 0 : index
    %33 = vector.load %arg4[%c0_12, %c0_13] : memref<1x128xf32, #tpu.memory_space<vmem>>, vector<1x128xf32>
    %34 = vector.broadcast %33 : vector<1x128xf32> to vector<4x128xf32>
    %35 = arith.addf %32, %34 : vector<4x128xf32>
    %c0_14 = arith.constant 0 : index
    %c0_15 = arith.constant 0 : index
    %36 = vector.load %arg5[%c0_14, %c0_15] : memref<4x128xf32, #tpu.memory_space<vmem>>, vector<4x128xf32>
    tpu.vector_store %arg5[%c0_14, %c0_15], %35 {strides = array<i32>} : memref<4x128xf32, #tpu.memory_space<vmem>>, vector<4x128xf32>,
    return
  }
  func.func @transform_0(%arg0: i32) -> (i32, i32) {
    %c0_i32 = arith.constant 0 : i32
    %c0_i32_0 = arith.constant 0 : i32
    return %c0_i32, %arg0 : i32, i32
  }
  func.func @transform_1(%arg0: i32) -> (i32, i32) {
    %c0_i32 = arith.constant 0 : i32
    %c0_i32_0 = arith.constant 0 : i32
    return %c0_i32, %arg0 : i32, i32
  }
  func.func @transform_2(%arg0: i32) -> (i32, i32) {
    %c0_i32 = arith.constant 0 : i32
    %c0_i32_0 = arith.constant 0 : i32
    return %c0_i32, %arg0 : i32, i32
  }
  func.func @transform_3(%arg0: i32) -> (i32, i32) {
    %c0_i32 = arith.constant 0 : i32
    %c0_i32_0 = arith.constant 0 : i32
    return %c0_i32, %arg0 : i32, i32
  }
  func.func @transform_4(%arg0: i32) -> (i32, i32) {
    %c0_i32 = arith.constant 0 : i32
    %c0_i32_0 = arith.constant 0 : i32
    return %c0_i32, %arg0 : i32, i32
  }
}

</mosaic_0001>

<bundles_post_ra>
// kernel: tpu_custom_call.1
= control target key start
LH: loop header
LB: loop body
LE: loop exit
PB: predicated region body
PF: predicated region fallthrough
CT: control target
= control target key end

     0   :  { %9 = vsyncpa [#allocation3], 0  ;;  %s245_s0 = inlined_call_operand.hbm [shape: f32[4,128], index: 0, kind: input, shape index: {}]   ;;  %s246_s1 = inlined_call_operand.hbm [shape: f32[4,128], index: 1, kind: input, shape index: {}]   ;;  %s247_s2 = inlined_call_operand.vmem [shape: f32[1,128], index: 2, kind: input, shape index: {}]   ;;  %s248_s3 = inlined_call_operand.vmem [shape: f32[1,128], index: 3, kind: input, shape index: {}]   ;;  %s249_s4 = inlined_call_operand.hbm [shape: f32[4,128], index: 4, kind: output, shape index: {}]  }
   0x1   :  { %10 = vsyncpa [#allocation6], 0 }
   0x2   :  { %11 = vsyncpa [#allocation4], 0  ;;  %s197_s15 = smov [#allocation2]   ;;  %s198_s17 = smov [#allocation5]  }
   0x3   :  { %s18_s16 = sshll.u32 %s197_s15, 4  ;;  %s28_s18 = sshll.u32 %s198_s17, 4  ;;  %s19_s16 = int_to_ptr.vmem [resolvable:$true] %s18_s16  ;;  %s29_s18 = int_to_ptr.vmem [resolvable:$true] %s28_s18 }
   0x4   :  { %s139_s19 = scalar_lea.vmem %s19_s16, 64  ;;  %p144_p1 = scmp.lt.s32.totalorder %s19_s16, %s19_s16 }
   0x5   :  { %p140_p0 = scmp.ne.s32.totalorder %s19_s16, %s139_s19  ;;  %p145_p2 = scmp.lt.s32.totalorder %s139_s19, %s139_s19 }
   0x7   :  { %p146_p3 = por %p145_p2, %p144_p1 }
   0x9   :  { %p147_p4 = pnand %p146_p3, %p140_p0 }
   0xb   :  { %150 = shalt.err (!%p147_p4)
}
   0xc   :  { %21 = dma.hbm_to_vmem [thread:$0]  %s245_s0, 64, %s19_s16, [#allocation3]  }
   0xd   :  { %s159_s22 = scalar_lea.vmem %s29_s18, 64  ;;  %p164_p6 = scmp.lt.s32.totalorder %s29_s18, %s29_s18 }
   0xe   :  { %p160_p5 = scmp.ne.s32.totalorder %s29_s18, %s159_s22  ;;  %p165_p7 = scmp.lt.s32.totalorder %s159_s22, %s159_s22 }
  0x10   :  { %p166_p8 = por %p165_p7, %p164_p6 }
  0x12   :  { %p167_p9 = pnand %p166_p8, %p160_p5 }
  0x14   :  { %170 = shalt.err (!%p167_p9)
}
  0x15   :  { %31 = dma.hbm_to_vmem [thread:$0]  %s246_s1, 64, %s29_s18, [#allocation6]  }
  0x16   :  { %191 = dma.done.wait [#allocation3], 64  }
  0x17   :  { %192 = vsyncadd [#allocation3], 4294967232 }
  0x18   :  { %193 = dma.done.wait [#allocation6], 64  }
  0x19   :  { %194 = vsyncadd [#allocation6], 4294967232  ;;  %v42_v0 = vld [vmem:[#allocation2] sm:$0xf]  ;;  %v43_v1 = vld [vmem:[#allocation5] sm:$0xf]  ;;  %v63_v10 = vlaneseq }
  0x1a   :  { %vm45_vm0 = vcmask 1043456   ;;  %v44_v2 = vadd.f32 %v43_v1, %v42_v0  ;;  %s199_s0 = smov 32   ;;  %s200_s25 = smov 96   ;;  %v86_v38 = vld [vmem:[%s247_s2] sm:$0x1] }
  0x1b   :  { %s201_s1 = smov 64   ;;  %v64_v13 = vshrl.u32 %v63_v10, 7  ;;  %v122_v42 = vld [vmem:[%s248_s3] ss:$0 sm:$0xff]  ;;  %s202_s30 = smov [#allocation7]  }
  0x1c   :  { %v46_v3 = vsel %vm45_vm0, %v44_v2, 0.0  ;;  %s112_s5 = sshll.u32 %s202_s30, 4  ;;  %s113_s5 = int_to_ptr.vmem [resolvable:$true] %s112_s5 }
  0x1d   :  { %v47_v4 = vrot.slane %v46_v3, 4  ;;  %v65_v17 = vsub.s32 0, %v64_v13  ;;  %s171_s6 = scalar_lea.vmem %s113_s5, 64  ;;  %p176_p11 = scmp.lt.s32.totalorder %s113_s5, %s113_s5 }
  0x1e   :  { %p172_p10 = scmp.ne.s32.totalorder %s113_s5, %s171_s6  ;;  %p177_p12 = scmp.lt.s32.totalorder %s171_s6, %s171_s6 }
  0x1f   :  { %v48_v5 = vadd.f32 %v47_v4, %v46_v3 }
  0x20   :  { %p178_p13 = por %p177_p12, %p176_p11 }
  0x21   :  { %v49_v6 = vrot.slane %v48_v5, 2 }
  0x22   :  { %p179_p0 = pnand %p178_p13, %p172_p10 }
  0x23   :  { %v50_v7 = vadd.f32 %v49_v6, %v48_v5 }
  0x25   :  { %v51_v8 = vrot.slane %v50_v7, 1 }
  0x27   :  { %v52_v9 = vadd.f32 %v51_v8, %v50_v7 }
  0x29   :  { %53 = vrot.lane.b32.xlu0 %v52_v9, %s199_s0  ;;  %59 = vrot.lane.b32.xlu1 %v52_v9, %s200_s25 }
  0x2d   :  { %56 = vrot.lane.b32.xlu0 %v52_v9, %s201_s1 }
  0x9b   :  { %v54_v11 = vpop.permute.xlu0 %53  ;;  %v60_v15 = vpop.permute.xlu1 %59 }
  0x9c   :  { %v55_v12 = vadd.f32 %v54_v11, %v52_v9 }
  0x9f   :  { %v57_v14 = vpop.permute.xlu0 %56 }
  0xa0   :  { %v58_v16 = vadd.f32 %v57_v14, %v55_v12 }
  0xa2   :  { %v61_v18 = vadd.f32 %v60_v15, %v58_v16 }
  0xa4   :  { %v62_v19 = vmul.f32 0.0625, %v61_v18 }
  0xa6   :  { %v66_v20 = vrot.slane %v62_v19, %v65_v17 }
  0xa8   :  { %v67_v21 = vsub.f32 %v44_v2, %v66_v20 }
  0xaa   :  { %v68_v22 = vmul.f32 %v67_v21, %v67_v21 }
  0xac   :  { %v69_v23 = vsel %vm45_vm0, %v68_v22, 0.0 }
  0xad   :  { %v70_v24 = vrot.slane %v69_v23, 4 }
  0xaf   :  { %v71_v25 = vadd.f32 %v70_v24, %v69_v23 }
  0xb1   :  { %v72_v26 = vrot.slane %v71_v25, 2 }
  0xb3   :  { %v73_v27 = vadd.f32 %v72_v26, %v71_v25 }
  0xb5   :  { %v74_v28 = vrot.slane %v73_v27, 1 }
  0xb7   :  { %v75_v29 = vadd.f32 %v74_v28, %v73_v27 }
  0xb9   :  { %79 = vrot.lane.b32.xlu0 %v75_v29, %s201_s1  ;;  %76 = vrot.lane.b32.xlu1 %v75_v29, %s199_s0 }
  0xbd   :  { %82 = vrot.lane.b32.xlu1 %v75_v29, %s200_s25 }
 0x12b   :  { %v77_v30 = vpop.permute.xlu1 %76  ;;  %v80_v32 = vpop.permute.xlu0 %79 }
 0x12c   :  { %v78_v31 = vadd.f32 %v77_v30, %v75_v29 }
 0x12e   :  { %v81_v33 = vadd.f32 %v80_v32, %v78_v31 }
 0x12f   :  { %v83_v34 = vpop.permute.xlu1 %82 }
 0x130   :  { %v84_v35 = vadd.f32 %v83_v34, %v81_v33 }
 0x132   :  { %v85_v36 = vmul.f32 0.0625, %v84_v35 }
 0x134   :  { %v87_v37 = vadd.f32 1e-05, %v85_v36 }
 0x136   :  { %129 = vrsqrt.f32 %v87_v37 }
 0x143   :  { %v130_v39 = vpop.eup %129 }
 0x144   :  { %v89_v40 = vmul.f32 %v130_v39, %v86_v38 }
 0x146   :  { %v94_v41 = vrot.slane %v89_v40, %v65_v17 }
 0x148   :  { %v96_v43 = vmul.f32 %v94_v41, %v67_v21 }
 0x14a   :  { %v104_v44 = vadd.f32 %v122_v42, %v96_v43 }
 0x14c   :  { %105 = vst [vmem:[#allocation7] sm:$0xf] %v104_v44 }
 0x14d   :  { %182 = shalt.err (!%p179_p0)
}
 0x14e   :  { %115 = dma.vmem_to_hbm [thread:$0]  %s113_s5, 64, %s249_s4, [#allocation4]  }
 0x14f   :  { %195 = dma.done.wait [#allocation4], 64  }
 0x150   :  { %196 = vsyncadd [#allocation4], 4294967232 }
 0x151   :  { %119 = vsyncpa [#allocation3], 1 }
 0x152   :  { %120 = vsyncpa [#allocation6], 1 }
 0x153   :  { %121 = vsyncpa [#allocation4], 1 }

</bundles_post_ra>
